<compile_context>
chip_gen: v5e
topology: v5e:2x2
jax: 0.10.0
libtpu: 0.0.40
codegen_flags: <defaults>
</compile_context>

<pallas_src>
import jax
import jax.numpy as jnp
import numpy as np
from jax.experimental import pallas as pl
from jax.experimental.pallas import tpu as pltpu


def _freq_loss_kernel(x_ref, y_ref, csht_ref, csw_ref, out_ref, acc_ref):
    tb, H, W = x_ref.shape
    n = pl.program_id(1)

    # Zero the per-core elementwise accumulator at the start of each sweep.
    @pl.when(n == 0)
    def _():
        acc_ref[...] = jnp.zeros_like(acc_ref)

    csht = csht_ref[...]                     # (H, 2H) = [C_H | S_H]
    csw = csw_ref[...]                       # (W, 2W) = [C_W | S_W]

    def fft2_mag_t(z):
        # z: (TB, H, W) -> |FFT2(z)| in transposed (k_w, k_h) order, (TB, W, H).
        # Stage 1 (DFT along W): one flat MXU matmul.
        m = jnp.dot(z.reshape(tb * H, W), csw,
                    preferred_element_type=jnp.float32)           # (TB*H, 2W)
        # Swap minor dims so stage 2 is also one flat matmul (XLU transpose).
        m3t = jnp.transpose(m.reshape(tb, H, 2 * W), (0, 2, 1))   # (TB, 2W, H)
        # Stage 2 (DFT along H): one flat MXU matmul against [C_H | S_H].
        t = jnp.dot(m3t.reshape(tb * 2 * W, H), csht,
                    preferred_element_type=jnp.float32)           # (TB*2W, 2H)
        t = t.reshape(tb, 2 * W, 2 * H)
        # Quadrants (indexed [k_w, k_h]):
        #   [:W,:H]=CwCh   [W:,:H]=SwCh   [:W,H:]=CwSh   [W:,H:]=SwSh
        # FFT2(z) = (ChCw - ShSw) - i (ChSw + ShCw); sign irrelevant for |.|
        re = t[:, :W, :H] - t[:, W:, H:]
        im = t[:, :W, H:] + t[:, W:, :H]
        return jnp.sqrt(re * re + im * im)                        # (TB, W, H)

    d = fft2_mag_t(x_ref[...]) - fft2_mag_t(y_ref[...])
    # Reduce over the image-batch axis inside the step (pure VALU adds);
    # only the tiny (W, H) accumulator is stored back each step.
    acc_ref[...] += jnp.sum(d * d, axis=0)

    # Finalize: one cross-lane reduction per parallel slice, write partial sum.
    @pl.when(n == pl.num_programs(1) - 1)
    def _():
        out_ref[...] = jnp.sum(acc_ref[...], keepdims=True).reshape(1, 1, 1)


def _fused_dft_mats(h, w):
    # [C | S] with the phase reduced mod n in exact int32 arithmetic first so
    # large h, w keep full f32 fractional precision in cos/sin.
    def cs(n):
        k = jnp.arange(n, dtype=jnp.int32)
        ph = (k[:, None] * k[None, :]) % n
        a = (2.0 * jnp.pi / float(n)) * ph.astype(jnp.float32)
        return jnp.concatenate([jnp.cos(a), jnp.sin(a)], axis=1)  # (n, 2n)
    return cs(h), cs(w)                       # csht (H, 2H), csw (W, 2W)


def _vmem_plan():
    # Generation-aware budgets: v7x has 64 MiB VMEM per TensorCore, so leave
    # headroom; v5e/v6e have 128 MiB and can run larger tiles.
    try:
        cap = int(pltpu.get_tpu_info().vmem_capacity_bytes)
    except Exception:
        cap = 128 * 1024 * 1024
    if cap <= 64 * 1024 * 1024:               # v7x-class
        return 24 * 1024 * 1024, 48 * 1024 * 1024
    return 32 * 1024 * 1024, 64 * 1024 * 1024


def _choose_tb(n_imgs, p, h, w, tb_budget):
    # Per-image working set (f32): double-buffered x/y blocks + stage-1/2
    # intermediates + quadrant slices + magnitudes/diff (~72*H*W bytes);
    # budget with headroom at 96*H*W.
    per_img = 96 * h * w
    fixed = 16 * h * h + 16 * w * w + 4 * h * w + (256 << 10)
    tb = max(1, min(1024, (tb_budget - fixed) // per_img))
    tb = min(tb, pl.cdiv(n_imgs, p))          # no bigger than the work per core
    # Shrink TB while zero-padding overhead would exceed ~12.5% of real work.
    def padded(t):
        return p * t * pl.cdiv(n_imgs, p * t)
    while tb > 1 and padded(tb) - n_imgs > max(n_imgs // 8, p):
        tb = max(1, tb // 2)
    return tb


def frequency_domain_loss(inputs, reconstructions):
    """JAX/Pallas equivalent of FrequencyDomainLoss.forward (NCHW inputs)."""
    assert inputs.shape == reconstructions.shape
    B, C, H, W = inputs.shape
    N = B * C

    # Keep bf16 inputs in bf16 (halves HBM read traffic); otherwise f32.
    in_dtype = jnp.bfloat16 if inputs.dtype == jnp.bfloat16 else jnp.float32
    x = inputs.reshape(N, H, W).astype(in_dtype)
    y = reconstructions.reshape(N, H, W).astype(in_dtype)

    csht, csw = _fused_dft_mats(H, W)

    tb_budget, vmem_limit = _vmem_plan()
    P = 2                                     # both v7x TensorCores get work
    TB = _choose_tb(N, P, H, W, tb_budget)
    G = pl.cdiv(N, P * TB)
    N_pad = P * TB * G
    if N_pad != N:
        pad = ((0, N_pad - N), (0, 0), (0, 0))
        x = jnp.pad(x, pad)
        y = jnp.pad(y, pad)

    partials = pl.pallas_call(
        _freq_loss_kernel,
        out_shape=jax.ShapeDtypeStruct((P, 1, 1), jnp.float32),
        grid_spec=pltpu.PrefetchScalarGridSpec(
            num_scalar_prefetch=0,
            grid=(P, G),
            in_specs=[
                pl.BlockSpec((TB, H, W), lambda p, n: (p * G + n, 0, 0)),   # x
                pl.BlockSpec((TB, H, W), lambda p, n: (p * G + n, 0, 0)),   # y
                pl.BlockSpec((H, 2 * H), lambda p, n: (0, 0)),   # [C_H | S_H]
                pl.BlockSpec((W, 2 * W), lambda p, n: (0, 0)),   # [C_W | S_W]
            ],
            out_specs=pl.BlockSpec((1, 1, 1), lambda p, n: (p, 0, 0)),
            scratch_shapes=[pltpu.VMEM((W, H), jnp.float32)],
        ),
        compiler_params=pltpu.CompilerParams(
            dimension_semantics=("parallel", "arbitrary"),
            vmem_limit_bytes=vmem_limit,
        ),
    )(x, y, csht, csw)

    return jnp.sum(partials) * (1.0 / float(N * H * W))


def _reference_loss(inputs, reconstructions):
    xm = jnp.abs(jnp.fft.fft2(inputs))
    ym = jnp.abs(jnp.fft.fft2(reconstructions))
    return jnp.mean((xm - ym) ** 2)


if __name__ == "__main__":
    key = jax.random.PRNGKey(0)
    k1, k2 = jax.random.split(key)
    B, C, H, W = 2, 4, 16, 16
    inputs = jax.random.normal(k1, (B, C, H, W), dtype=jnp.float32)
    reconstructions = inputs + 0.1 * jax.random.normal(
        k2, (B, C, H, W), dtype=jnp.float32)

    loss = frequency_domain_loss(inputs, reconstructions)
    loss = jax.block_until_ready(loss)

    ref = jax.block_until_ready(_reference_loss(inputs, reconstructions))
    # DEFAULT matmul precision (bf16 operand passes, f32 accumulation) -> keep
    # the looser tolerance that already reflects that choice.
    np.testing.assert_allclose(np.asarray(loss), np.asarray(ref),
                               rtol=2e-2, atol=1e-3)
    print("KERNEL_OK")
</pallas_src>

<mosaic_0001>
module attributes {stable_mosaic.version = 11 : i64} {
  func.func @_freq_loss_kernel(%arg0: i32, %arg1: i32, %arg2: memref<4x16x16xf32, #tpu.memory_space<vmem>>, %arg3: memref<4x16x16xf32, #tpu.memory_space<vmem>>, %arg4: memref<16x32xf32, #tpu.memory_space<vmem>>, %arg5: memref<16x32xf32, #tpu.memory_space<vmem>>, %arg6: memref<1x1x1xf32, #tpu.memory_space<vmem>>, %arg7: memref<16x16xf32, #tpu.memory_space<vmem>>) attributes {dimension_semantics = [#tpu.dimension_semantics<parallel>, #tpu.dimension_semantics<arbitrary>], iteration_bounds = array<i64: 2, 1>, scalar_prefetch = 0 : i64, scratch_operands = 1 : i64, tpu.core_type = #tpu.core_type<tc>, window_params = [{transform_indices = @transform_0, window_bounds = array<i64: 4, 16, 16>}, {transform_indices = @transform_1, window_bounds = array<i64: 4, 16, 16>}, {pipeline_mode = #tpu.pipeline_mode<synchronous>, transform_indices = @transform_2, window_bounds = array<i64: 16, 32>}, {pipeline_mode = #tpu.pipeline_mode<synchronous>, transform_indices = @transform_3, window_bounds = array<i64: 16, 32>}, {transform_indices = @transform_4, window_bounds = array<i64: 1, 1, 1>}]} {
    %c0_i32 = arith.constant 0 : i32
    %0 = arith.cmpi eq, %arg1, %c0_i32 : i32
    %1 = arith.extui %0 : i1 to i32
    %c0_i32_0 = arith.constant 0 : i32
    %2 = arith.cmpi ne, %1, %c0_i32_0 : i32
    scf.if %2 {
      %cst_20 = arith.constant 0.000000e+00 : f32
      %50 = vector.broadcast %cst_20 : f32 to vector<16x16xf32>
      %c0_21 = arith.constant 0 : index
      %c0_22 = arith.constant 0 : index
      %51 = vector.load %arg7[%c0_21, %c0_22] : memref<16x16xf32, #tpu.memory_space<vmem>>, vector<16x16xf32>
      tpu.vector_store %arg7[%c0_21, %c0_22], %50 {strides = array<i32>} : memref<16x16xf32, #tpu.memory_space<vmem>>, vector<16x16xf32>,
    } else {
    }
    %c0 = arith.constant 0 : index
    %c0_1 = arith.constant 0 : index
    %3 = vector.load %arg4[%c0, %c0_1] : memref<16x32xf32, #tpu.memory_space<vmem>>, vector<16x32xf32>
    %c0_2 = arith.constant 0 : index
    %c0_3 = arith.constant 0 : index
    %4 = vector.load %arg5[%c0_2, %c0_3] : memref<16x32xf32, #tpu.memory_space<vmem>>, vector<16x32xf32>
    %c0_4 = arith.constant 0 : index
    %c0_5 = arith.constant 0 : index
    %c0_6 = arith.constant 0 : index
    %5 = vector.load %arg2[%c0_4, %c0_5, %c0_6] : memref<4x16x16xf32, #tpu.memory_space<vmem>>, vector<4x16x16xf32>
    %6 = vector.shape_cast %5 : vector<4x16x16xf32> to vector<64x16xf32>
    %cst = arith.constant dense<0.000000e+00> : vector<64x32xf32>
    %7 = tpu.matmul %6, %4, %cst {dimension_numbers = #tpu.dot_dimension_numbers<[1], [0], [0], [1], [0, 0, 1, 1], [], []>} : vector<64x16xf32>, vector<16x32xf32>, vector<64x32xf32> -> vector<64x32xf32>
    %8 = vector.shape_cast %7 : vector<64x32xf32> to vector<4x16x32xf32>
    %9 = tpu.transpose %8, [0, 2, 1] : vector<4x16x32xf32> -> vector<4x32x16xf32>
    %10 = vector.shape_cast %9 : vector<4x32x16xf32> to vector<128x16xf32>
    %cst_7 = arith.constant dense<0.000000e+00> : vector<128x32xf32>
    %11 = tpu.matmul %10, %3, %cst_7 {dimension_numbers = #tpu.dot_dimension_numbers<[1], [0], [0], [1], [0, 0, 1, 1], [], []>} : vector<128x16xf32>, vector<16x32xf32>, vector<128x32xf32> -> vector<128x32xf32>
    %12 = vector.shape_cast %11 : vector<128x32xf32> to vector<4x32x32xf32>
    %13 = vector.extract_strided_slice %12 {offsets = [0, 0, 0], sizes = [4, 16, 16], strides = [1, 1, 1]} : vector<4x32x32xf32> to vector<4x16x16xf32>
    %14 = vector.extract_strided_slice %12 {offsets = [0, 16, 16], sizes = [4, 16, 16], strides = [1, 1, 1]} : vector<4x32x32xf32> to vector<4x16x16xf32>
    %15 = arith.subf %13, %14 : vector<4x16x16xf32>
    %16 = vector.extract_strided_slice %12 {offsets = [0, 0, 16], sizes = [4, 16, 16], strides = [1, 1, 1]} : vector<4x32x32xf32> to vector<4x16x16xf32>
    %17 = vector.extract_strided_slice %12 {offsets = [0, 16, 0], sizes = [4, 16, 16], strides = [1, 1, 1]} : vector<4x32x32xf32> to vector<4x16x16xf32>
    %18 = arith.addf %16, %17 : vector<4x16x16xf32>
    %19 = arith.mulf %15, %15 : vector<4x16x16xf32>
    %20 = arith.mulf %18, %18 : vector<4x16x16xf32>
    %21 = arith.addf %19, %20 : vector<4x16x16xf32>
    %22 = math.sqrt %21 : vector<4x16x16xf32>
    %c0_8 = arith.constant 0 : index
    %c0_9 = arith.constant 0 : index
    %c0_10 = arith.constant 0 : index
    %23 = vector.load %arg3[%c0_8, %c0_9, %c0_10] : memref<4x16x16xf32, #tpu.memory_space<vmem>>, vector<4x16x16xf32>
    %24 = vector.shape_cast %23 : vector<4x16x16xf32> to vector<64x16xf32>
    %cst_11 = arith.constant dense<0.000000e+00> : vector<64x32xf32>
    %25 = tpu.matmul %24, %4, %cst_11 {dimension_numbers = #tpu.dot_dimension_numbers<[1], [0], [0], [1], [0, 0, 1, 1], [], []>} : vector<64x16xf32>, vector<16x32xf32>, vector<64x32xf32> -> vector<64x32xf32>
    %26 = vector.shape_cast %25 : vector<64x32xf32> to vector<4x16x32xf32>
    %27 = tpu.transpose %26, [0, 2, 1] : vector<4x16x32xf32> -> vector<4x32x16xf32>
    %28 = vector.shape_cast %27 : vector<4x32x16xf32> to vector<128x16xf32>
    %cst_12 = arith.constant dense<0.000000e+00> : vector<128x32xf32>
    %29 = tpu.matmul %28, %3, %cst_12 {dimension_numbers = #tpu.dot_dimension_numbers<[1], [0], [0], [1], [0, 0, 1, 1], [], []>} : vector<128x16xf32>, vector<16x32xf32>, vector<128x32xf32> -> vector<128x32xf32>
    %30 = vector.shape_cast %29 : vector<128x32xf32> to vector<4x32x32xf32>
    %31 = vector.extract_strided_slice %30 {offsets = [0, 0, 0], sizes = [4, 16, 16], strides = [1, 1, 1]} : vector<4x32x32xf32> to vector<4x16x16xf32>
    %32 = vector.extract_strided_slice %30 {offsets = [0, 16, 16], sizes = [4, 16, 16], strides = [1, 1, 1]} : vector<4x32x32xf32> to vector<4x16x16xf32>
    %33 = arith.subf %31, %32 : vector<4x16x16xf32>
    %34 = vector.extract_strided_slice %30 {offsets = [0, 0, 16], sizes = [4, 16, 16], strides = [1, 1, 1]} : vector<4x32x32xf32> to vector<4x16x16xf32>
    %35 = vector.extract_strided_slice %30 {offsets = [0, 16, 0], sizes = [4, 16, 16], strides = [1, 1, 1]} : vector<4x32x32xf32> to vector<4x16x16xf32>
    %36 = arith.addf %34, %35 : vector<4x16x16xf32>
    %37 = arith.mulf %33, %33 : vector<4x16x16xf32>
    %38 = arith.mulf %36, %36 : vector<4x16x16xf32>
    %39 = arith.addf %37, %38 : vector<4x16x16xf32>
    %40 = math.sqrt %39 : vector<4x16x16xf32>
    %41 = arith.subf %22, %40 : vector<4x16x16xf32>
    %c0_13 = arith.constant 0 : index
    %c0_14 = arith.constant 0 : index
    %42 = vector.load %arg7[%c0_13, %c0_14] : memref<16x16xf32, #tpu.memory_space<vmem>>, vector<16x16xf32>
    %43 = arith.mulf %41, %41 : vector<4x16x16xf32>
    %cst_15 = arith.constant dense<0.000000e+00> : vector<16x16xf32>
    %44 = vector.multi_reduction <add>, %43, %cst_15 [0] : vector<4x16x16xf32> to vector<16x16xf32>
    %45 = arith.addf %42, %44 : vector<16x16xf32>
    %c0_16 = arith.constant 0 : index
    %c0_17 = arith.constant 0 : index
    %46 = vector.load %arg7[%c0_16, %c0_17] : memref<16x16xf32, #tpu.memory_space<vmem>>, vector<16x16xf32>
    tpu.vector_store %arg7[%c0_16, %c0_17], %45 {strides = array<i32>} : memref<16x16xf32, #tpu.memory_space<vmem>>, vector<16x16xf32>,
    %c0_i32_18 = arith.constant 0 : i32
    %47 = arith.cmpi eq, %arg1, %c0_i32_18 : i32
    %48 = arith.extui %47 : i1 to i32
    %c0_i32_19 = arith.constant 0 : i32
    %49 = arith.cmpi ne, %48, %c0_i32_19 : i32
    scf.if %49 {
      %c0_20 = arith.constant 0 : index
      %c0_21 = arith.constant 0 : index
      %50 = vector.load %arg7[%c0_20, %c0_21] : memref<16x16xf32, #tpu.memory_space<vmem>>, vector<16x16xf32>
      %51 = vector.shape_cast %50 : vector<16x16xf32> to vector<1x16x16xf32>
      %cst_22 = arith.constant dense<0.000000e+00> : vector<1xf32>
      %52 = vector.multi_reduction <add>, %51, %cst_22 [1, 2] : vector<1x16x16xf32> to vector<1xf32>
      %53 = vector.shape_cast %52 : vector<1xf32> to vector<1x1x1xf32>
      %54 = vector.extract %53[0, 0, 0] : f32 from vector<1x1x1xf32>
      %55 = vector.broadcast %54 : f32 to vector<1x1xf32>
      %56 = vector.shape_cast %55 : vector<1x1xf32> to vector<1x1x1xf32>
      %c0_23 = arith.constant 0 : index
      %c0_24 = arith.constant 0 : index
      %c0_25 = arith.constant 0 : index
      %57 = vector.load %arg6[%c0_23, %c0_24, %c0_25] : memref<1x1x1xf32, #tpu.memory_space<vmem>>, vector<1x1x1xf32>
      tpu.vector_store %arg6[%c0_23, %c0_24, %c0_25], %56 {strides = array<i32>} : memref<1x1x1xf32, #tpu.memory_space<vmem>>, vector<1x1x1xf32>,
    } else {
    }
    return
  }
  func.func @transform_0(%arg0: i32, %arg1: i32) -> (i32, i32, i32) {
    %c1_i32 = arith.constant 1 : i32
    %0 = arith.muli %arg0, %c1_i32 : i32
    %1 = arith.addi %0, %arg1 : i32
    %c0_i32 = arith.constant 0 : i32
    %c0_i32_0 = arith.constant 0 : i32
    %c0_i32_1 = arith.constant 0 : i32
    return %1, %c0_i32, %c0_i32_0 : i32, i32, i32
  }
  func.func @transform_1(%arg0: i32, %arg1: i32) -> (i32, i32, i32) {
    %c1_i32 = arith.constant 1 : i32
    %0 = arith.muli %arg0, %c1_i32 : i32
    %1 = arith.addi %0, %arg1 : i32
    %c0_i32 = arith.constant 0 : i32
    %c0_i32_0 = arith.constant 0 : i32
    %c0_i32_1 = arith.constant 0 : i32
    return %1, %c0_i32, %c0_i32_0 : i32, i32, i32
  }
  func.func @transform_2(%arg0: i32, %arg1: i32) -> (i32, i32) {
    %c0_i32 = arith.constant 0 : i32
    %c0_i32_0 = arith.constant 0 : i32
    %c0_i32_1 = arith.constant 0 : i32
    return %c0_i32, %c0_i32_0 : i32, i32
  }
  func.func @transform_3(%arg0: i32, %arg1: i32) -> (i32, i32) {
    %c0_i32 = arith.constant 0 : i32
    %c0_i32_0 = arith.constant 0 : i32
    %c0_i32_1 = arith.constant 0 : i32
    return %c0_i32, %c0_i32_0 : i32, i32
  }
  func.func @transform_4(%arg0: i32, %arg1: i32) -> (i32, i32, i32) {
    %c0_i32 = arith.constant 0 : i32
    %c0_i32_0 = arith.constant 0 : i32
    %c0_i32_1 = arith.constant 0 : i32
    return %arg0, %c0_i32, %c0_i32_0 : i32, i32, i32
  }
}

</mosaic_0001>

<bundles_post_ra>
// kernel: tpu_custom_call.1
= control target key start
LH: loop header
LB: loop body
LE: loop exit
PB: predicated region body
PF: predicated region fallthrough
CT: control target
= control target key end

     0   :  { %s2482_s0 = inlined_call_operand.hbm [shape: f32[8,16,16], index: 0, kind: input, shape index: {}]   ;;  %s2483_s1 = inlined_call_operand.hbm [shape: f32[8,16,16], index: 1, kind: input, shape index: {}]   ;;  %s2484_s2 = inlined_call_operand.hbm [shape: f32[16,32], index: 2, kind: input, shape index: {}]   ;;  %s2485_s3 = inlined_call_operand.hbm [shape: f32[16,32], index: 3, kind: input, shape index: {}]   ;;  %s2486_s4 = inlined_call_operand.vmem [shape: f32[2,1,1], index: 4, kind: output, shape index: {}]  }
   0x1   :  { %2490 = sst [smem:[#allocation14_spill]] %s2484_s2 }
   0x2   :  { %9 = vsyncpa [#allocation4], 0 }
   0x3   :  { %11 = vsyncpa [#allocation4 + $0x1], 0 }
   0x4   :  { %12 = vsyncpa [#allocation6], 0 }
   0x5   :  { %14 = vsyncpa [#allocation6 + $0x1], 0 }
   0x6   :  { %15 = vsyncpa [#allocation9], 0  ;;  %s1983_s15 = smov 0   ;;  %s1985_s16 = smov 0  }
   0x7   :  { %s1987_s17 = smov 0   ;;  %s1989_s18 = smov 0  }
   0x8   :  { %s1991_s19 = smov 0   ;;  %s1993_s20 = smov 0  }
   0x9 LB: > { %s2487_s21 = sadd.s32 4294967295, %s1949_s20   ;;  %p55_p0 = scmp.ne.s32.totalorder %s1933_s16, %s1929_s15  ;;  %s1949_s20 = sphi %s1993_s20, %s21_s20   ;;  %s1945_s19 = sphi %s1991_s19, %s2502_s19   ;;  %s1941_s18 = sphi %s1989_s18, %s2501_s18   ;;  %s1937_s17 = sphi %s1987_s17, %s2500_s17   ;;  %s1933_s16 = sphi %s1985_s16, %s2499_s16   ;;  %s1929_s15 = sphi %s1983_s15, %s2498_s15  }
   0xa   : > { %p2015_p1 = scmp.eq.s32.totalorder %s2487_s21, 0  ;;  %p1572_p2 = scmp.ge.s32.totalorder %s1949_s20, 1 }
   0xb   : > { %p162_p3 = scmp.lt.s32.totalorder %s1949_s20, 3  ;;  %s2493_s2 = sld [smem:[#allocation14_spill]] }
   0xc   : > { %p2023_p4 = por %p2015_p1, %p55_p0  ;;  %s1951_s28 = smov [#allocation7]  }
   0xd   : > { %p2030_p5 = pnand %p1572_p2, %p162_p3  ;;  %s175_s29 = sshll.u32 %s1951_s28, 4  ;;  %s176_s29 = int_to_ptr.vmem [resolvable:$true] %s175_s29 }
   0xe   : > { %s187_s6 = sshll.u32 %s2485_s3, 4  ;;  %s2488_s7 = smov 128   ;;  %s188_s6 = int_to_ptr.hbm [resolvable:$true] %s187_s6 }
   0xf   : > { %p1661_p6 = pneg %p2030_p5  ;;  %s1953_s8 = smov 8  }
  0x10   : > { %s1954_s9 = smov [#allocation8]   ;;  %s33_s11 = sadd.s32 1, %s1945_s19 }
  0x11   : > { %s173_s26 = sshll.u32 %s2493_s2, 4  ;;  %p1662_p7 = pnand %p1661_p6, %p2015_p1  ;;  %s174_s26 = int_to_ptr.hbm [resolvable:$true] %s173_s26 }
  0x12   : > { %s189_s10 = sshll.u32 %s1954_s9, 4  ;;  %s42_s12 = sadd.s32 1, %s1937_s17  ;;  %s190_s10 = int_to_ptr.vmem [resolvable:$true] %s189_s10 }
  0x13   : > { %1664 = dma.hbm_to_vmem [thread:$0]  (!%p1662_p7), %s174_s26, 256, %s176_s29, [#allocation6], %s2488_s7, %s2488_s7, %s1953_s8  }
  0x14   : > { %1667 = dma.hbm_to_vmem [thread:$0]  (!%p1662_p7), %s188_s6, 256, %s190_s10, [#allocation9], %s2488_s7, %s2488_s7, %s1953_s8  }
  0x15   : > { %p35_p8 = scmp.ge.s32.totalorder %s33_s11, 2  ;;  %p49_p9 = scmp.ne.s32.totalorder %s1937_s17, %s1933_s16 }
  0x16   : > { %p50_p10 = scmp.eq.s32.totalorder %s1949_s20, 0  ;;  %p1677_p11 = scmp.lt.s32.totalorder %s1949_s20, 2 }
  0x17   : > { %s2504_s11 = smov (%p35_p8, %s33_s11), 0  ;;  %s203_s14 = sand.u32 1, %s1937_s17  }
  0x18   : > { %p2055_p12 = por %p50_p10, %p49_p9  ;;  %s39_s15 = ssub.s32 %s1945_s19, %s2504_s11 }
  0x19   : > { %p40_p13 = scmp.eq.s32.totalorder %s39_s15, 0  ;;  %s1576_s24 = sshll.u32 %s203_s14, 6 }
  0x1a   : > { %s1640_s25 = sshll.u32 %s1945_s19, 6  ;;  %s207_s5 = scalar_lea.vmem [#allocation3], %s1576_s24 }
  0x1b   : > { %s2064_s26 = scalar_select %p40_p13, %s1937_s17, %s42_s12  }
  0x1c   : > { %s214_s30 = scalar_lea.hbm %s2482_s0, %s1640_s25  ;;  %s217_s6 = sshll.u32 %s207_s5, 4  ;;  %s218_s6 = int_to_ptr.vmem [resolvable:$true] %s217_s6 }
  0x1d   : > { %s215_s9 = sshll.u32 %s214_s30, 4  ;;  %p1669_p0 = pnand %p1677_p11, %p2055_p12  ;;  %s216_s9 = int_to_ptr.hbm [resolvable:$true] %s215_s9 }
  0x1e   : > { %s238_s15 = scalar_lea.hbm %s2483_s1, %s1640_s25  ;;  %s204_s12 = scalar_lea.sflag [#allocation4], %s203_s14 }
  0x1f   : > { %s239_s7 = sshll.u32 %s238_s15, 4  ;;  %s2496_s2 = smov 128   ;;  %s240_s7 = int_to_ptr.hbm [resolvable:$true] %s239_s7 }
  0x20   : > { %1671 = dma.hbm_to_vmem [thread:$0]  (!%p1669_p0), %s216_s9, 1024, %s218_s6, %s204_s12, %s2496_s2, %s2496_s2, %s1953_s8  }
  0x21   : > { %s231_s28 = scalar_lea.vmem [#allocation5], %s1576_s24  ;;  %s227_s30 = sand.u32 1, %s1949_s20  }
  0x22   : > { %s241_s29 = sshll.u32 %s231_s28, 4  ;;  %s228_s5 = scalar_lea.sflag [#allocation6], %s227_s30  ;;  %s242_s29 = int_to_ptr.vmem [resolvable:$true] %s241_s29 }
  0x23   : > { %1674 = dma.hbm_to_vmem [thread:$0]  (!%p1669_p0), %s240_s7, 1024, %s242_s29, %s228_s5, %s2496_s2, %s2496_s2, %s1953_s8  }
  0x24   : > { %253 = sbr.rel (%p2030_p5) target bundleno = 1111 (0x457), region = 36  ;;  %s255_s21 = sand.u32 (!%p2030_p5), 1, %s1933_s16  }
  0x25   : > { %s1585_s13 = sshll.u32 (!%p2030_p5), %s255_s21, 6  ;;  %s256_s14 = scalar_lea.sflag (!%p2030_p5), [#allocation4], %s255_s21 }
  0x26   : > { %s2086_s25 = scalar_lea.vmem (!%p2030_p5), [#allocation3], %s1585_s13 }
  0x29   : > { %1912 = dma.done.wait (%p2023_p4), %s256_s14, 1024  }
  0x2a   : > { %1914 = vsyncadd (%p2023_p4), %s256_s14, 4294966272  ;;  %s2497_s24 = sadd.s32 4294967295, %s1949_s20   ;;  %s2094_s7 = scalar_lea.vmem [#allocation5], %s1585_s13 }
  0x2b   : > { %s265_s6 = sand.u32 1, %s2497_s24  }
  0x2c   : > { %s266_s2 = scalar_lea.sflag [#allocation6], %s265_s6 }
  0x2d   : > { %1916 = dma.done.wait (%p2023_p4), %s266_s2, 1024  }
  0x2e   : > { %1918 = vsyncadd (%p2023_p4), %s266_s2, 4294966272 }
  0x2f   : > { %1920 = dma.done.wait (%p2015_p1), [#allocation6], 256  }
  0x30   : > { %1922 = vsyncadd (%p2015_p1), [#allocation6], 4294967040 }
  0x31   : > { %1924 = dma.done.wait (%p2015_p1), [#allocation9], 256  }
  0x32   : > { %1926 = vsyncadd (%p2015_p1), [#allocation9], 4294967040  ;;  %v325_v0 = vld [vmem:[#allocation8 + $0x8] sm:$0xff]  ;;  %v324_v1 = vld [vmem:[#allocation8] sm:$0xff]  ;;  %vm319_vm0 = vcmask 130048   ;;  %s1955_s22 = smov 16  }
  0x33   : > { %373 = vmatpush.msra.mxu0 %v325_v0  ;;  %911 = vmatpush.msra.mxu2 %v325_v0  ;;  %v326_v2 = vld [vmem:[%s2086_s25] sm:$0xff]  ;;  %v327_v4 = vld [vmem:[%s2086_s25 + $0x8] sm:$0xff]  ;;  %v328_v6 = vld [vmem:[%s2086_s25 + $0x10] sm:$0xff]  ;;  %s1956_s23 = smov 112   ;;  %p312_p1 = scmp.lt.s32.totalorder %s1941_s18, 1 }
  0x34   : > { %v865_v3 = vld [vmem:[%s2094_s7] sm:$0xff]  ;;  %v866_v5 = vld [vmem:[%s2094_s7 + $0x8] sm:$0xff]  ;;  %v867_v7 = vld [vmem:[%s2094_s7 + $0x10] sm:$0xff] }
  0x35   : > { %374 = vmatpush.msra.mxu0 %v324_v1  ;;  %912 = vmatpush.msra.mxu2 %v324_v1  ;;  %v329_v8 = vld [vmem:[%s2086_s25 + $0x18] sm:$0xff]  ;;  %v330_v10 = vld [vmem:[%s2086_s25 + $0x20] sm:$0xff]  ;;  %v331_v12 = vld [vmem:[%s2086_s25 + $0x28] sm:$0xff]  ;;  %s2506_s18 = smov (!%p312_p1, %s1941_s18), 1 }
  0x36   : > { %1589 = vmatmul.msk.f32.vlgmr.msra.gmra.mxu0 %vm319_vm0, %v326_v2  ;;  %1613 = vmatmul.msk.f32.vlgmr.msra.gmra.mxu2 %vm319_vm0, %v865_v3  ;;  %v868_v9 = vld [vmem:[%s2094_s7 + $0x18] sm:$0xff]  ;;  %v869_v11 = vld [vmem:[%s2094_s7 + $0x20] sm:$0xff]  ;;  %v870_v13 = vld [vmem:[%s2094_s7 + $0x28] sm:$0xff]  ;;  %s314_s9 = scalar_lea.vmem %s2486_s4, %s2506_s18 }
  0x37   : > { %v332_v14 = vld [vmem:[%s2086_s25 + $0x30] sm:$0xff]  ;;  %v333_v15 = vld [vmem:[%s2086_s25 + $0x38] sm:$0xff]  ;;  %v323_v30 = vld [vmem:[#allocation7 + $0x8] sm:$0xff] }
  0x38   : > { %v871_v16 = vld [vmem:[%s2094_s7 + $0x30] sm:$0xff]  ;;  %v872_v17 = vld [vmem:[%s2094_s7 + $0x38] sm:$0xff]  ;;  %1643 = vmatpush.msra.mxu1 %v323_v30  ;;  %1645 = vmatpush.msra.mxu3 %v323_v30  ;;  %v322_v35 = vld [vmem:[#allocation7] sm:$0xff] }
  0x39   : > { %590 = vmatpush.msrb.mxu0 %v323_v30  ;;  %1128 = vmatpush.msrb.mxu2 %v323_v30 }
  0x3a   : > { %1644 = vmatpush.msra.mxu1 %v322_v35  ;;  %1646 = vmatpush.msra.mxu3 %v322_v35 }
  0x3b   : > { %591 = vmatpush.msrb.mxu0 %v322_v35  ;;  %1129 = vmatpush.msrb.mxu2 %v322_v35 }
  0x3e   : > { %1590 = vmatmul.msk.f32.gmra.mxu0 %vm319_vm0, %v327_v4  ;;  %1614 = vmatmul.msk.f32.gmra.mxu2 %vm319_vm0, %v866_v5 }
  0x46   : > { %1591 = vmatmul.msk.f32.gmra.mxu0 %vm319_vm0, %v328_v6  ;;  %1615 = vmatmul.msk.f32.gmra.mxu2 %vm319_vm0, %v867_v7 }
  0x4e   : > { %1592 = vmatmul.msk.f32.gmra.mxu0 %vm319_vm0, %v329_v8  ;;  %1616 = vmatmul.msk.f32.gmra.mxu2 %vm319_vm0, %v868_v9 }
  0x56   : > { %1593 = vmatmul.msk.f32.gmra.mxu0 %vm319_vm0, %v330_v10  ;;  %1617 = vmatmul.msk.f32.gmra.mxu2 %vm319_vm0, %v869_v11 }
  0x5e   : > { %1594 = vmatmul.msk.f32.gmra.mxu0 %vm319_vm0, %v331_v12  ;;  %1618 = vmatmul.msk.f32.gmra.mxu2 %vm319_vm0, %v870_v13 }
  0x66   : > { %1595 = vmatmul.msk.f32.gmra.mxu0 %vm319_vm0, %v332_v14  ;;  %1619 = vmatmul.msk.f32.gmra.mxu2 %vm319_vm0, %v871_v16 }
  0x6e   : > { %1596 = vmatmul.msk.f32.gmra.mxu0 %vm319_vm0, %v333_v15  ;;  %1620 = vmatmul.msk.f32.gmra.mxu2 %vm319_vm0, %v872_v17 }
  0xb3   : > { %v376_v18 = vpop.f32.mrf.mxu0 }
  0xb9   : > { %v914_v19 = vpop.f32.mrf.mxu2 }
  0xbb   : > { %v379_v20 = vpop.f32.mrf.mxu0 }
  0xc1   : > { %v917_v21 = vpop.f32.mrf.mxu2 }
  0xc3   : > { %v382_v22 = vpop.f32.mrf.mxu0 }
  0xc4   : > { %432 = vxpose.xlu1.b32.start [1/2] (short) (narrow) %v382_v22, 32 }
  0xc9   : > { %v920_v23 = vpop.f32.mrf.mxu2 }
  0xca   : > { %970 = vxpose.xlu0.b32.start [1/2] (short) (narrow) %v920_v23, 32 }
  0xcb   : > { %v385_v24 = vpop.f32.mrf.mxu0 }
  0xcc   : > { %433 = vxpose.xlu1.b32.end [2/2] (short) (narrow) %v385_v24, 32 }
  0xd1   : > { %v923_v25 = vpop.f32.mrf.mxu2 }
  0xd2   : > { %971 = vxpose.xlu0.b32.end [2/2] (short) (narrow) %v923_v25, 32 }
  0xd3   : > { %v388_v26 = vpop.f32.mrf.mxu0 }
  0xd9   : > { %v926_v28 = vpop.f32.mrf.mxu2 }
  0xda   : > { %1002 = vxpose.xlu2.b32.start [1/2] (short) (narrow) %v926_v28, 32 }
  0xdb   : > { %v391_v27 = vpop.f32.mrf.mxu0 }
  0xe1   : > { %v929_v29 = vpop.f32.mrf.mxu2 }
  0xe2   : > { %1003 = vxpose.xlu2.b32.end [2/2] (short) (narrow) %v929_v29, 32 }
  0xe3   : > { %v394_v31 = vpop.f32.mrf.mxu0 }
  0xe4   : > { %938 = vxpose.xlu1.b32.start [1/2] (short) (narrow) %v914_v19, 32 }
  0xe9   : > { %v932_v33 = vpop.f32.mrf.mxu2 }
  0xea   : > { %464 = vxpose.xlu0.b32.start [1/2] (short) (narrow) %v388_v26, 32 }
  0xeb   : > { %v397_v32 = vpop.f32.mrf.mxu0 }
  0xec   : > { %939 = vxpose.xlu1.b32.end [2/2] (short) (narrow) %v917_v21, 32 }
  0xf1   : > { %v935_v34 = vpop.f32.mrf.mxu2 }
  0xf2   : > { %465 = vxpose.xlu0.b32.end [2/2] (short) (narrow) %v391_v27, 32 }
  0xfa   : > { %1034 = vxpose.xlu2.b32.start [1/2] (short) (narrow) %v932_v33, 32 }
 0x102   : > { %1035 = vxpose.xlu2.b32.end [2/2] (short) (narrow) %v935_v34, 32 }
 0x104   : > { %496 = vxpose.xlu1.b32.start [1/2] (short) (narrow) %v394_v31, 32 }
 0x10a   : > { %400 = vxpose.xlu0.b32.start [1/2] (short) (narrow) %v376_v18, 32 }
 0x10c   : > { %497 = vxpose.xlu1.b32.end [2/2] (short) (narrow) %v397_v32, 32 }
 0x112   : > { %401 = vxpose.xlu0.b32.end [2/2] (short) (narrow) %v379_v20, 32 }
 0x168   : > { %v448_v36 = vpop.trf.xlu1 }
 0x169   : > { %1601 = vmatmul.msk.f32.vlgmr.msra.gmra.mxu1 %vm319_vm0, %v448_v36 }
 0x16e   : > { %v986_v37 = vpop.trf.xlu0 }
 0x16f   : > { %1625 = vmatmul.msk.f32.vlgmr.msra.gmra.mxu3 %vm319_vm0, %v986_v37 }
 0x170   : > { %v449_v38 = vpop.trf.xlu1 }
 0x171   : > { %1602 = vmatmul.msk.f32.gmra.mxu1 %vm319_vm0, %v449_v38 }
 0x173   : > { %v1018_v49 = vpop.trf.xlu2 }
 0x176   : > { %v987_v39 = vpop.trf.xlu0 }
 0x177   : > { %1626 = vmatmul.msk.f32.gmra.mxu3 %vm319_vm0, %v987_v39 }
 0x178   : > { %v450_v40 = vpop.trf.xlu1 }
 0x179   : > { %1603 = vmatmul.msk.f32.gmra.mxu1 %vm319_vm0, %v450_v40 }
 0x17b   : > { %v1019_v52 = vpop.trf.xlu2 }
 0x17e   : > { %v988_v41 = vpop.trf.xlu0 }
 0x17f   : > { %1627 = vmatmul.msk.f32.gmra.mxu3 %vm319_vm0, %v988_v41 }
 0x180   : > { %v451_v42 = vpop.trf.xlu1 }
 0x181   : > { %1604 = vmatmul.msk.f32.gmra.mxu1 %vm319_vm0, %v451_v42 }
 0x183   : > { %v1020_v55 = vpop.trf.xlu2 }
 0x186   : > { %v989_v43 = vpop.trf.xlu0 }
 0x187   : > { %1628 = vmatmul.msk.f32.gmra.mxu3 %vm319_vm0, %v989_v43 }
 0x188   : > { %v954_v45 = vpop.trf.xlu1 }
 0x189   : > { %1621 = vmatmul.msk.f32.vlgmr.msrb.gmra.mxu2 %vm319_vm0, %v954_v45 }
 0x18b   : > { %v1021_v58 = vpop.trf.xlu2 }
 0x18e   : > { %v480_v44 = vpop.trf.xlu0 }
 0x18f   : > { %1605 = vmatmul.msk.f32.gmra.mxu1 %vm319_vm0, %v480_v44  ;;  %1629 = vmatmul.msk.f32.gmra.mxu3 %vm319_vm0, %v1018_v49 }
 0x190   : > { %v955_v47 = vpop.trf.xlu1 }
 0x191   : > { %1622 = vmatmul.msk.f32.gmra.mxu2 %vm319_vm0, %v955_v47 }
 0x193   : > { %v1050_v61 = vpop.trf.xlu2 }
 0x196   : > { %v481_v46 = vpop.trf.xlu0 }
 0x197   : > { %1606 = vmatmul.msk.f32.gmra.mxu1 %vm319_vm0, %v481_v46  ;;  %1630 = vmatmul.msk.f32.gmra.mxu3 %vm319_vm0, %v1019_v52 }
 0x198   : > { %v956_v50 = vpop.trf.xlu1 }
 0x199   : > { %1623 = vmatmul.msk.f32.gmra.mxu2 %vm319_vm0, %v956_v50 }
 0x19b   : > { %v1051_v0 = vpop.trf.xlu2 }
 0x19e   : > { %v482_v48 = vpop.trf.xlu0 }
 0x19f   : > { %1607 = vmatmul.msk.f32.gmra.mxu1 %vm319_vm0, %v482_v48  ;;  %1631 = vmatmul.msk.f32.gmra.mxu3 %vm319_vm0, %v1020_v55 }
 0x1a0   : > { %v957_v53 = vpop.trf.xlu1 }
 0x1a1   : > { %1624 = vmatmul.msk.f32.gmra.mxu2 %vm319_vm0, %v957_v53 }
 0x1a3   : > { %v1052_v2 = vpop.trf.xlu2 }
 0x1a6   : > { %v483_v51 = vpop.trf.xlu0 }
 0x1a7   : > { %1608 = vmatmul.msk.f32.gmra.mxu1 %vm319_vm0, %v483_v51  ;;  %1632 = vmatmul.msk.f32.gmra.mxu3 %vm319_vm0, %v1021_v58 }
 0x1a8   : > { %v512_v57 = vpop.trf.xlu1 }
 0x1ab   : > { %v1053_v3 = vpop.trf.xlu2 }
 0x1ae   : > { %v416_v54 = vpop.trf.xlu0 }
 0x1af   : > { %1597 = vmatmul.msk.f32.vlgmr.msrb.gmra.mxu0 %vm319_vm0, %v416_v54  ;;  %1609 = vmatmul.msk.f32.gmra.mxu1 %vm319_vm0, %v512_v57 }
 0x1b0   : > { %v513_v60 = vpop.trf.xlu1  ;;  %1633 = vmatmul.msk.f32.gmra.mxu3 %vm319_vm0, %v1050_v61 }
 0x1b6   : > { %v417_v56 = vpop.trf.xlu0 }
 0x1b7   : > { %1598 = vmatmul.msk.f32.gmra.mxu0 %vm319_vm0, %v417_v56  ;;  %1610 = vmatmul.msk.f32.gmra.mxu1 %vm319_vm0, %v513_v60 }
 0x1b8   : > { %v514_v63 = vpop.trf.xlu1  ;;  %1634 = vmatmul.msk.f32.gmra.mxu3 %vm319_vm0, %v1051_v0 }
 0x1be   : > { %v418_v59 = vpop.trf.xlu0 }
 0x1bf   : > { %1599 = vmatmul.msk.f32.gmra.mxu0 %vm319_vm0, %v418_v59  ;;  %1611 = vmatmul.msk.f32.gmra.mxu1 %vm319_vm0, %v514_v63 }
 0x1c0   : > { %v515_v1 = vpop.trf.xlu1  ;;  %1635 = vmatmul.msk.f32.gmra.mxu3 %vm319_vm0, %v1052_v2 }
 0x1c6   : > { %v419_v62 = vpop.trf.xlu0 }
 0x1c7   : > { %1600 = vmatmul.msk.f32.gmra.mxu0 %vm319_vm0, %v419_v62  ;;  %1612 = vmatmul.msk.f32.gmra.mxu1 %vm319_vm0, %v515_v1 }
 0x1c8   : > { %1636 = vmatmul.msk.f32.gmra.mxu3 %vm319_vm0, %v1053_v3 }
 0x1e6   : > { %v2172_v4 = vpop.f32.mrf.mxu1 }
 0x1ee   : > { %v2174_v5 = vpop.f32.mrf.mxu1 }
 0x1f2   : > { %v2176_v6 = vpop.f32.mrf.mxu3 }
 0x1f6   : > { %v611_v7 = vpop.f32.mrf.mxu1 }
 0x1fa   : > { %v2178_v8 = vpop.f32.mrf.mxu3 }
 0x1fe   : > { %v614_v9 = vpop.f32.mrf.mxu1 }
 0x202   : > { %v1149_v10 = vpop.f32.mrf.mxu3 }
 0x20a   : > { %v1152_v12 = vpop.f32.mrf.mxu3 }
 0x20c   : > { %v2180_v11 = vpop.f32.mrf.mxu1  ;;  %v2184_v14 = vpop.f32.mrf.mxu2 }
 0x212   : > { %v2190_v17 = vpop.f32.mrf.mxu3 }
 0x214   : > { %v2186_v15 = vpop.f32.mrf.mxu1  ;;  %v2192_v18 = vpop.f32.mrf.mxu2 }
 0x21a   : > { %v2196_v21 = vpop.f32.mrf.mxu3 }
 0x21c   : > { %v623_v19 = vpop.f32.mrf.mxu1  ;;  %v1137_v22 = vpop.f32.mrf.mxu2 }
 0x222   : > { %v1161_v25 = vpop.f32.mrf.mxu3 }
 0x224   : > { %v626_v23 = vpop.f32.mrf.mxu1  ;;  %v1140_v26 = vpop.f32.mrf.mxu2 }
 0x22a   : > { %v1164_v28 = vpop.f32.mrf.mxu3 }
 0x22c   : > { %v2182_v13 = vpop.f32.mrf.mxu0  ;;  %v2201_v27 = vpop.f32.mrf.mxu1 }
 0x233   : > { %v2211_v30 = vpop.f32.mrf.mxu3 }
 0x234   : > { %v2188_v16 = vpop.f32.mrf.mxu0  ;;  %v2209_v29 = vpop.f32.mrf.mxu1 }
 0x23b   : > { %v2219_v32 = vpop.f32.mrf.mxu3 }
 0x23c   : > { %v599_v20 = vpop.f32.mrf.mxu0  ;;  %v635_v31 = vpop.f32.mrf.mxu1 }
 0x23d   : > { %681 = vrot.lane.b32.xlu0 %v599_v20, %s1955_s22  ;;  %649 = vrot.lane.b32.xlu2 %v599_v20, %s1956_s23 }
 0x243   : > { %v1173_v34 = vpop.f32.mrf.mxu3 }
 0x244   : > { %v602_v24 = vpop.f32.mrf.mxu0  ;;  %v638_v33 = vpop.f32.mrf.mxu1 }
 0x245   : > { %1219 = vrot.lane.b32.xlu2 %v1137_v22, %s1955_s22  ;;  %651 = vrot.lane.b32.xlu0 %v602_v24, %s1956_s23 }
 0x246   : > { %683 = vrot.lane.b32.xlu1 %v602_v24, %s1955_s22 }
 0x24b   : > { %v1176_v35 = vpop.f32.mrf.mxu3 }
 0x24d   : > { %685 = vrot.lane.b32.xlu2 %v611_v7, %s1955_s22  ;;  %1187 = vrot.lane.b32.xlu0 %v1137_v22, %s1956_s23 }
 0x24e   : > { %1221 = vrot.lane.b32.xlu1 %v1140_v26, %s1955_s22 }
 0x255   : > { %653 = vrot.lane.b32.xlu2 %v611_v7, %s1956_s23  ;;  %1193 = vrot.lane.b32.xlu0 %v1152_v12, %s1956_s23 }
 0x256   : > { %655 = vrot.lane.b32.xlu1 %v614_v9, %s1956_s23 }
 0x25d   : > { %1189 = vrot.lane.b32.xlu2 %v1140_v26, %s1956_s23  ;;  %1227 = vrot.lane.b32.xlu0 %v1161_v25, %s1955_s22 }
 0x25e   : > { %1191 = vrot.lane.b32.xlu1 %v1149_v10, %s1956_s23 }
 0x265   : > { %687 = vrot.lane.b32.xlu2 %v614_v9, %s1955_s22  ;;  %1195 = vrot.lane.b32.xlu0 %v1161_v25, %s1956_s23 }
 0x266   : > { %1225 = vrot.lane.b32.xlu1 %v1152_v12, %s1955_s22 }
 0x26d   : > { %1223 = vrot.lane.b32.xlu2 %v1149_v10, %s1955_s22  ;;  %695 = vrot.lane.b32.xlu0 %v638_v33, %s1955_s22 }
 0x26e   : > { %691 = vrot.lane.b32.xlu1 %v626_v23, %s1955_s22 }
 0x275   : > { %689 = vrot.lane.b32.xlu2 %v623_v19, %s1955_s22  ;;  %663 = vrot.lane.b32.xlu0 %v638_v33, %s1956_s23 }
 0x276   : > { %659 = vrot.lane.b32.xlu1 %v626_v23, %s1956_s23 }
 0x27d   : > { %657 = vrot.lane.b32.xlu2 %v623_v19, %s1956_s23  ;;  %1201 = vrot.lane.b32.xlu0 %v1176_v35, %s1956_s23 }
 0x27e   : > { %693 = vrot.lane.b32.xlu1 %v635_v31, %s1955_s22 }
 0x285   : > { %1229 = vrot.lane.b32.xlu2 %v1164_v28, %s1955_s22 }
 0x286   : > { %661 = vrot.lane.b32.xlu1 %v635_v31, %s1956_s23 }
 0x28d   : > { %1197 = vrot.lane.b32.xlu2 %v1164_v28, %s1956_s23 }
 0x28e   : > { %1233 = vrot.lane.b32.xlu1 %v1176_v35, %s1955_s22 }
 0x295   : > { %1231 = vrot.lane.b32.xlu2 %v1173_v34, %s1955_s22 }
 0x296   : > { %1199 = vrot.lane.b32.xlu1 %v1173_v34, %s1956_s23 }
 0x297   : > { %v2236_v36 = vpop.permute.xlu2 %649 }
 0x29f   : > { %v1220_v37 = vpop.permute.xlu2 %1219 }
 0x2a0   : > { %v1243_v45 = vadd.f32 %v1220_v37, %v2184_v14 }
 0x2a2   : > { %v1259_v50 = vmul.f32 %v1243_v45, %v1243_v45 }
 0x2a7   : > { %v686_v38 = vpop.permute.xlu2 %685 }
 0x2a8   : > { %v707_v39 = vadd.f32 %v686_v38, %v2172_v4 }
 0x2aa   : > { %v723_v40 = vmul.f32 %v707_v39, %v707_v39 }
 0x2ac   : > { %741 = vrot.lane.b32.xlu0 %v723_v40, %s1956_s23 }
 0x2af   : > { %v682_v41 = vpop.permute.xlu0 %681  ;;  %v2240_v42 = vpop.permute.xlu2 %653 }
 0x2b0   : > { %v705_v43 = vadd.f32 %v682_v41, %v2182_v13 }
 0x2b2   : > { %v721_v44 = vmul.f32 %v705_v43, %v705_v43 }
 0x2b4   : > { %737 = vrot.lane.b32.xlu2 %v721_v44, %s1956_s23 }
 0x2b7   : > { %v2245_v46 = vpop.permute.xlu2 %1189  ;;  %v2247_v47 = vpop.permute.xlu0 %651 }
 0x2b8   : > { %v684_v48 = vpop.permute.xlu1 %683 }
 0x2b9   : > { %v706_v49 = vadd.f32 %v684_v48, %v2188_v16 }
 0x2bb   : > { %v722_v51 = vmul.f32 %v706_v49, %v706_v49 }
 0x2bc   : > { %1275 = vrot.lane.b32.xlu2 %v1259_v50, %s1956_s23 }
 0x2bd   : > { %739 = vrot.lane.b32.xlu1 %v722_v51, %s1956_s23 }
 0x2bf   : > { %v688_v52 = vpop.permute.xlu2 %687  ;;  %v1188_v53 = vpop.permute.xlu0 %1187 }
 0x2c0   : > { %v708_v54 = vadd.f32 %v688_v52, %v2174_v5  ;;  %v1222_v55 = vpop.permute.xlu1 %1221 }
 0x2c1   : > { %v1244_v56 = vadd.f32 %v1222_v55, %v2192_v18 }
 0x2c2   : > { %v724_v57 = vmul.f32 %v708_v54, %v708_v54  ;;  %v673_v54 = vsub.f32 %v2182_v13, %v2236_v36 }
 0x2c3   : > { %v1260_v58 = vmul.f32 %v1244_v56, %v1244_v56 }
 0x2c4   : > { %743 = vrot.lane.b32.xlu2 %v724_v57, %s1956_s23  ;;  %v713_v55 = vmul.f32 %v673_v54, %v673_v54 }
 0x2c5   : > { %1277 = vrot.lane.b32.xlu1 %v1260_v58, %s1956_s23  ;;  %v1211_v58 = vsub.f32 %v2184_v14, %v1188_v53  ;;  %v675_v53 = vsub.f32 %v2172_v4, %v2240_v42  ;;  %v674_v4 = vsub.f32 %v2188_v16, %v2247_v47 }
 0x2c7   : > { %v1224_v59 = vpop.permute.xlu2 %1223  ;;  %v2256_v60 = vpop.permute.xlu0 %1193 }
 0x2c8   : > { %v1245_v61 = vadd.f32 %v1224_v59, %v2176_v6  ;;  %v656_v62 = vpop.permute.xlu1 %655 }
 0x2ca   : > { %v1261_v63 = vmul.f32 %v1245_v61, %v1245_v61  ;;  %v1251_v61 = vmul.f32 %v1211_v58, %v1211_v58  ;;  %v1214_v58 = vsub.f32 %v2178_v8, %v2256_v60 }
 0x2cc   : > { %1279 = vrot.lane.b32.xlu0 %v1261_v63, %s1956_s23 }
 0x2cf   : > { %v690_v0 = vpop.permute.xlu2 %689  ;;  %v1228_v2 = vpop.permute.xlu0 %1227 }
 0x2d0   : > { %v709_v1 = vadd.f32 %v690_v0, %v2180_v11  ;;  %v2261_v3 = vpop.permute.xlu1 %1191  ;;  %v1247_v22 = vadd.f32 %v1228_v2, %v2190_v17 }
 0x2d2   : > { %v725_v7 = vmul.f32 %v709_v1, %v709_v1  ;;  %v1263_v31 = vmul.f32 %v1247_v22, %v1247_v22 }
 0x2d4   : > { %745 = vrot.lane.b32.xlu1 %v725_v7, %s1956_s23 }
 0x2d7   : > { %v2264_v9 = vpop.permute.xlu2 %657  ;;  %v2267_v19 = vpop.permute.xlu0 %1195 }
 0x2d8   : > { %v1226_v10 = vpop.permute.xlu1 %1225 }
 0x2d9   : > { %v1246_v12 = vadd.f32 %v1226_v10, %v2178_v8  ;;  %v676_v10 = vsub.f32 %v2174_v5, %v656_v62 }
 0x2db   : > { %v1262_v20 = vmul.f32 %v1246_v12, %v1246_v12 }
 0x2dd   : > { %1281 = vrot.lane.b32.xlu2 %v1262_v20, %s1956_s23 }
 0x2df   : > { %v1230_v23 = vpop.permute.xlu2 %1229  ;;  %v696_v34 = vpop.permute.xlu0 %695 }
 0x2e0   : > { %v1248_v24 = vadd.f32 %v1230_v23, %v2196_v21  ;;  %v692_v25 = vpop.permute.xlu1 %691  ;;  %v712_v35 = vadd.f32 %v696_v34, %v2209_v29  ;;  %v716_v23 = vmul.f32 %v676_v10, %v676_v10 }
 0x2e1   : > { %v710_v26 = vadd.f32 %v692_v25, %v2186_v15 }
 0x2e2   : > { %v1264_v28 = vmul.f32 %v1248_v24, %v1248_v24  ;;  %v728_v39 = vmul.f32 %v712_v35, %v712_v35 }
 0x2e3   : > { %v726_v33 = vmul.f32 %v710_v26, %v710_v26 }
 0x2e4   : > { %1285 = vrot.lane.b32.xlu1 %v1264_v28, %s1956_s23 }
 0x2e5   : > { %1283 = vrot.lane.b32.xlu2 %v1263_v31, %s1956_s23  ;;  %747 = vrot.lane.b32.xlu0 %v726_v33, %s1956_s23  ;;  %v715_v33 = vmul.f32 %v675_v53, %v675_v53 }
 0x2e7   : > { %v2277_v37 = vpop.permute.xlu2 %1197  ;;  %v2293_v59 = vpop.permute.xlu0 %663 }
 0x2e8   : > { %v2279_v38 = vpop.permute.xlu1 %659 }
 0x2ed   : > { %751 = vrot.lane.b32.xlu2 %v728_v39, %s1956_s23 }
 0x2ef   : > { %v1232_v40 = vpop.permute.xlu2 %1231  ;;  %v2296_v12 = vpop.permute.xlu0 %1201 }
 0x2f0   : > { %v1249_v41 = vadd.f32 %v1232_v40, %v2211_v30  ;;  %v694_v43 = vpop.permute.xlu1 %693 }
 0x2f1   : > { %v711_v44 = vadd.f32 %v694_v43, %v2201_v27 }
 0x2f2   : > { %v1265_v45 = vmul.f32 %v1249_v41, %v1249_v41 }
 0x2f3   : > { %v727_v48 = vmul.f32 %v711_v44, %v711_v44 }
 0x2f4   : > { %1287 = vrot.lane.b32.xlu1 %v1265_v45, %s1956_s23 }
 0x2f5   : > { %749 = vrot.lane.b32.xlu0 %v727_v48, %s1956_s23 }
 0x2f8   : > { %v2286_v49 = vpop.permute.xlu1 %661 }
 0x300   : > { %v1234_v50 = vpop.permute.xlu1 %1233 }
 0x301   : > { %v1250_v51 = vadd.f32 %v1234_v50, %v2219_v32 }
 0x303   : > { %v1266_v52 = vmul.f32 %v1250_v51, %v1250_v51  ;;  %v714_v51 = vmul.f32 %v674_v4, %v674_v4 }
 0x305   : > { %1289 = vrot.lane.b32.xlu0 %v1266_v52, %s1956_s23 }
 0x308   : > { %v2303_v62 = vpop.permute.xlu1 %1199 }
 0x30e   : > { %v738_v56 = vpop.permute.xlu2 %737 }
 0x30f   : > { %v761_v57 = vadd.f32 %v738_v56, %v713_v55  ;;  %v1212_v56 = vsub.f32 %v2192_v18, %v2245_v46  ;;  %v1213_v18 = vsub.f32 %v2176_v6, %v2261_v3  ;;  %v1215_v46 = vsub.f32 %v2190_v17, %v2267_v19 }
 0x310   : > { %v677_v19 = vsub.f32 %v2180_v11, %v2264_v9  ;;  %v2347_v11 = vsub.f32 %v2186_v15, %v2279_v38 }
 0x311   : > { %1735 = vrsqrt.f32 %v761_v57  ;;  %vm776_vm1 = vcmp.eq.f32.partialorder %v761_v57, inf  ;;  %v779_v41 = vand.u32 2147483648, %v761_v57  ;;  %vm778_vm3 = vcmp.eq.f32.partialorder %v761_v57, 0.0 }
 0x316   : > { %v1276_v63 = vpop.permute.xlu2 %1275 }
 0x317   : > { %v1736_v0 = vpop.eup %1735  ;;  %v1299_v1 = vadd.f32 %v1276_v63, %v1251_v61  ;;  %v1252_v63 = vmul.f32 %v1212_v56, %v1212_v56 }
 0x318   : > { %v770_v2 = vmul.f32 %v1736_v0, %v761_v57 }
 0x319   : > { %1737 = vrsqrt.f32 %v1299_v1  ;;  %vm1314_vm2 = vcmp.eq.f32.partialorder %v1299_v1, inf  ;;  %v1317_v43 = vand.u32 2147483648, %v1299_v1  ;;  %vm1316_vm4 = vcmp.eq.f32.partialorder %v1299_v1, 0.0 }
 0x31a   : > { %v771_v7 = vmul.f32 %v1736_v0, %v770_v2 }
 0x31c   : > { %v772_v13 = vmul.f32 0.5, %v771_v7 }
 0x31e   : > { %v773_v36 = vsub.f32 1.5, %v772_v13  ;;  %v744_v22 = vpop.permute.xlu2 %743  ;;  %v742_v31 = vpop.permute.xlu0 %741 }
 0x31f   : > { %v1738_v20 = vpop.eup %1737  ;;  %v2300_v26 = vadd.f32 %v744_v22, %v716_v23  ;;  %v2305_v35 = vadd.f32 %v742_v31, %v715_v33 }
 0x320   : > { %v1308_v14 = vmul.f32 %v1738_v20, %v1299_v1  ;;  %v774_v24 = vmul.f32 %v1736_v0, %v773_v36  ;;  %v1254_v0 = vmul.f32 %v1214_v58, %v1214_v58 }
 0x321   : > { %1739 = vrsqrt.f32 %v2300_v26  ;;  %vm812_vm5 = vcmp.eq.f32.partialorder %v2300_v26, inf  ;;  %vm814_vm6 = vcmp.eq.f32.partialorder %v2300_v26, 0.0  ;;  %vm800_vm13 = vcmp.eq.f32.partialorder %v2305_v35, inf }
 0x322   : > { %v1309_v25 = vmul.f32 %v1738_v20, %v1308_v14  ;;  %v775_v34 = vmul.f32 %v774_v24, %v761_v57  ;;  %1741 = vrsqrt.f32 %v2305_v35  ;;  %v1253_v14 = vmul.f32 %v1213_v18, %v1213_v18 }
 0x323   : > { %v1255_v24 = vmul.f32 %v1215_v46, %v1215_v46  ;;  %vm802_vm14 = vcmp.eq.f32.partialorder %v2305_v35, 0.0 }
 0x324   : > { %v1310_v28 = vmul.f32 0.5, %v1309_v25  ;;  %v777_v42 = vsel %vm776_vm1, %v761_v57, %v775_v34 }
 0x325   : > { %v780_v48 = vsel %vm778_vm3, %v779_v41, %v777_v42 }
 0x326   : > { %v1311_v5 = vsub.f32 1.5, %v1310_v28 }
 0x327   : > { %v1740_v44 = vpop.eup %1739 }
 0x328   : > { %v1312_v39 = vmul.f32 %v1738_v20, %v1311_v5  ;;  %v806_v54 = vmul.f32 %v1740_v44, %v2300_v26  ;;  %v1742_v47 = vpop.eup %1741 }
 0x329   : > { %v794_v61 = vmul.f32 %v1742_v47, %v2305_v35 }
 0x32a   : > { %v1313_v40 = vmul.f32 %v1312_v39, %v1299_v1  ;;  %v807_v57 = vmul.f32 %v1740_v44, %v806_v54 }
 0x32b   : > { %v795_v13 = vmul.f32 %v1742_v47, %v794_v61 }
 0x32c   : > { %v1315_v45 = vsel %vm1314_vm2, %v1299_v1, %v1313_v40  ;;  %v808_v1 = vmul.f32 0.5, %v807_v57 }
 0x32d   : > { %v1318_v50 = vsel %vm1316_vm4, %v1317_v43, %v1315_v45  ;;  %v796_v23 = vmul.f32 0.5, %v795_v13  ;;  %v717_v45 = vmul.f32 %v677_v19, %v677_v19 }
 0x32e   : > { %v2310_v52 = vsub.f32 %v780_v48, %v1318_v50  ;;  %v809_v60 = vsub.f32 1.5, %v808_v1  ;;  %v1216_v48 = vsub.f32 %v2196_v21, %v2277_v37  ;;  %v815_v50 = vand.u32 2147483648, %v2300_v26 }
 0x32f   : > { %v740_v55 = vpop.permute.xlu1 %739  ;;  %v797_v33 = vsub.f32 1.5, %v796_v23 }
 0x330   : > { %v2313_v16 = vadd.f32 %v740_v55, %v714_v51  ;;  %v810_v28 = vmul.f32 %v1740_v44, %v809_v60  ;;  %v1256_v19 = vmul.f32 %v1216_v48, %v1216_v48 }
 0x331   : > { %v798_v41 = vmul.f32 %v1742_v47, %v797_v33 }
 0x332   : > { %1743 = vrsqrt.f32 %v2313_v16  ;;  %v811_v42 = vmul.f32 %v810_v28, %v2300_v26  ;;  %vm788_vm7 = vcmp.eq.f32.partialorder %v2313_v16, inf  ;;  %vm790_vm8 = vcmp.eq.f32.partialorder %v2313_v16, 0.0 }
 0x333   : > { %v799_v15 = vmul.f32 %v798_v41, %v2305_v35  ;;  %v791_v1 = vand.u32 2147483648, %v2313_v16  ;;  %v803_v41 = vand.u32 2147483648, %v2305_v35 }
 0x334   : > { %v813_v47 = vsel %vm812_vm5, %v2300_v26, %v811_v42 }
 0x337   : > { %v1282_v2 = vpop.permute.xlu2 %1281  ;;  %v1278_v7 = vpop.permute.xlu1 %1277 }
 0x338   : > { %v1744_v10 = vpop.eup %1743  ;;  %v2321_v36 = vadd.f32 %v1282_v2, %v1254_v0  ;;  %v2323_v20 = vadd.f32 %v1278_v7, %v1252_v63  ;;  %v816_v0 = vsel %vm814_vm6, %v815_v50, %v813_v47  ;;  %v1413_v50 = vmul.f32 %v2310_v52, %v2310_v52 }
 0x339   : > { %v782_v8 = vmul.f32 %v1744_v10, %v2313_v16 }
 0x33a   : > { %1745 = vrsqrt.f32 %v2321_v36  ;;  %vm1350_vm9 = vcmp.eq.f32.partialorder %v2321_v36, inf  ;;  %vm1352_vm10 = vcmp.eq.f32.partialorder %v2321_v36, 0.0  ;;  %vm1326_vm11 = vcmp.eq.f32.partialorder %v2323_v20, inf }
 0x33b   : > { %v783_v22 = vmul.f32 %v1744_v10, %v782_v8  ;;  %1747 = vrsqrt.f32 %v2323_v20  ;;  %v1353_v8 = vand.u32 2147483648, %v2321_v36  ;;  %vm1328_vm12 = vcmp.eq.f32.partialorder %v2323_v20, 0.0 }
 0x33c   : > { %v1421_v52 = vsel %vm319_vm0, %v1413_v50, 0.0 }
 0x33d   : > { %v784_v53 = vmul.f32 0.5, %v783_v22  ;;  %v1329_v22 = vand.u32 2147483648, %v2323_v20 }
 0x33e   : > { %v1280_v25 = vpop.permute.xlu0 %1279 }
 0x33f   : > { %v2332_v31 = vadd.f32 %v1280_v25, %v1253_v14  ;;  %v1284_v6 = vpop.permute.xlu2 %1283  ;;  %v785_v34 = vsub.f32 1.5, %v784_v53 }
 0x340   : > { %v1746_v3 = vpop.eup %1745  ;;  %v2334_v5 = vadd.f32 %v1284_v6, %v1255_v24 }
 0x341   : > { %v1748_v17 = vpop.eup %1747  ;;  %v1344_v39 = vmul.f32 %v1746_v3, %v2321_v36  ;;  %1749 = vrsqrt.f32 %v2332_v31  ;;  %v786_v43 = vmul.f32 %v1744_v10, %v785_v34  ;;  %vm1338_vm15 = vcmp.eq.f32.partialorder %v2332_v31, inf }
 0x342   : > { %v1320_v4 = vmul.f32 %v1748_v17, %v2323_v20  ;;  %1751 = vrsqrt.f32 %v2334_v5  ;;  %vm1340_vm1 = vcmp.eq.f32.partialorder %v2332_v31, 0.0  ;;  %vm1362_vm2 = vcmp.eq.f32.partialorder %v2334_v5, inf }
 0x343   : > { %v1345_v40 = vmul.f32 %v1746_v3, %v1344_v39  ;;  %v787_v38 = vmul.f32 %v786_v43, %v2313_v16  ;;  %v801_v39 = vsel %vm800_vm13, %v2305_v35, %v799_v15  ;;  %vm1364_vm4 = vcmp.eq.f32.partialorder %v2334_v5, 0.0 }
 0x344   : > { %v1321_v44 = vmul.f32 %v1748_v17, %v1320_v4 }
 0x345   : > { %v1346_v9 = vmul.f32 0.5, %v1345_v40  ;;  %v789_v18 = vsel %vm788_vm7, %v2313_v16, %v787_v38 }
 0x346   : > { %v1322_v51 = vmul.f32 0.5, %v1321_v44  ;;  %v746_v54 = vpop.permute.xlu1 %745  ;;  %v792_v28 = vsel %vm790_vm8, %v791_v1, %v789_v18  ;;  %v1341_v44 = vand.u32 2147483648, %v2332_v31 }
 0x347   : > { %v1750_v55 = vpop.eup %1749  ;;  %v1347_v56 = vsub.f32 1.5, %v1346_v9  ;;  %v2354_v21 = vadd.f32 %v746_v54, %v717_v45 }
 0x348   : > { %v1752_v37 = vpop.eup %1751  ;;  %v1323_v58 = vsub.f32 1.5, %v1322_v51  ;;  %v1332_v57 = vmul.f32 %v1750_v55, %v2332_v31  ;;  %v804_v51 = vsel %vm802_vm14, %v803_v41, %v801_v39 }
 0x349   : > { %v1348_v61 = vmul.f32 %v1746_v3, %v1347_v56  ;;  %v1356_v63 = vmul.f32 %v1752_v37, %v2334_v5  ;;  %1753 = vrsqrt.f32 %v2354_v21  ;;  %vm824_vm3 = vcmp.eq.f32.partialorder %v2354_v21, inf }
 0x34a   : > { %v1324_v2 = vmul.f32 %v1748_v17, %v1323_v58  ;;  %v1333_v7 = vmul.f32 %v1750_v55, %v1332_v57  ;;  %vm826_vm5 = vcmp.eq.f32.partialorder %v2354_v21, 0.0 }
 0x34b   : > { %v1349_v10 = vmul.f32 %v1348_v61, %v2321_v36  ;;  %v1357_v13 = vmul.f32 %v1752_v37, %v1356_v63 }
 0x34c   : > { %v1325_v26 = vmul.f32 %v1324_v2, %v2323_v20  ;;  %v1334_v46 = vmul.f32 0.5, %v1333_v7  ;;  %v1365_v2 = vand.u32 2147483648, %v2334_v5  ;;  %v827_v7 = vand.u32 2147483648, %v2354_v21 }
 0x34d   : > { %v1351_v60 = vsel %vm1350_vm9, %v2321_v36, %v1349_v10  ;;  %v1358_v23 = vmul.f32 0.5, %v1357_v13 }
 0x34e   : > { %v1354_v14 = vsel %vm1352_vm10, %v1353_v8, %v1351_v60  ;;  %v1327_v53 = vsel %vm1326_vm11, %v2323_v20, %v1325_v26  ;;  %v1335_v24 = vsub.f32 1.5, %v1334_v46  ;;  %v680_v8 = vsub.f32 %v2209_v29, %v2293_v59 }
 0x34f   : > { %v1754_v25 = vpop.eup %1753  ;;  %v1406_v6 = vsub.f32 %v816_v0, %v1354_v14  ;;  %v1330_v3 = vsel %vm1328_vm12, %v1329_v22, %v1327_v53  ;;  %v1359_v33 = vsub.f32 1.5, %v1358_v23  ;;  %v1957_v60 = vmov 0.0  }
 0x350   : > { %v1404_v36 = vsub.f32 %v792_v28, %v1330_v3  ;;  %v1336_v34 = vmul.f32 %v1750_v55, %v1335_v24  ;;  %v818_v17 = vmul.f32 %v1754_v25, %v2354_v21  ;;  %v718_v55 = vmul.f32 %v2347_v11, %v2347_v11  ;;  %320 = vst.msk [vmem:[#allocation2] sm:$0xff] %vm319_vm0, %v1957_v60 }
 0x351   : > { %v1416_v20 = vmul.f32 %v1406_v6, %v1406_v6  ;;  %v1360_v16 = vmul.f32 %v1752_v37, %v1359_v33  ;;  %321 = vst.msk [vmem:[#allocation2 + $0x8] sm:$0xff] %vm319_vm0, %v1957_v60  ;;  %v720_v24 = vmul.f32 %v680_v8, %v680_v8  ;;  %v679_v29 = vsub.f32 %v2201_v27, %v2286_v49 }
 0x352   : > { %v1414_v4 = vmul.f32 %v1404_v36, %v1404_v36  ;;  %v1337_v42 = vmul.f32 %v1336_v34, %v2332_v31  ;;  %v819_v40 = vmul.f32 %v1754_v25, %v818_v17 }
 0x353   : > { %v1429_v43 = vsel %vm319_vm0, %v1416_v20, 0.0  ;;  %v1361_v56 = vmul.f32 %v1360_v16, %v2334_v5  ;;  %v719_v17 = vmul.f32 %v679_v29, %v679_v29 }
 0x354   : > { %v1428_v45 = vsel %vm319_vm0, %v1414_v4, 0.0  ;;  %v1339_v48 = vsel %vm1338_vm15, %v2332_v31, %v1337_v42  ;;  %v820_v9 = vmul.f32 0.5, %v819_v40 }
 0x355   : > { %v2394_v54 = vadd.f32 %v1429_v43, %v1428_v45  ;;  %v1342_v35 = vsel %vm1340_vm1, %v1341_v44, %v1339_v48  ;;  %v1363_v63 = vsel %vm1362_vm2, %v2334_v5, %v1361_v56  ;;  %v1217_v5 = vsub.f32 %v2211_v30, %v2303_v62 }
 0x356   : > { %v1405_v47 = vsub.f32 %v804_v51, %v1342_v35  ;;  %v821_v37 = vsub.f32 1.5, %v820_v9  ;;  %v1286_v15 = vpop.permute.xlu1 %1285  ;;  %v1366_v13 = vsel %vm1364_vm4, %v1365_v2, %v1363_v63 }
 0x357   : > { %v748_v38 = vpop.permute.xlu0 %747  ;;  %v2399_v58 = vadd.f32 %v1286_v15, %v1256_v19  ;;  %v1257_v36 = vmul.f32 %v1217_v5, %v1217_v5  ;;  %v1411_v29 = vld [vmem:[#allocation2] sm:$0xff] }
 0x358   : > { %v1415_v31 = vmul.f32 %v1405_v47, %v1405_v47  ;;  %v822_v57 = vmul.f32 %v1754_v25, %v821_v37  ;;  %v2401_v61 = vadd.f32 %v748_v38, %v718_v55  ;;  %v1218_v37 = vsub.f32 %v2219_v32, %v2296_v12 }
 0x359   : > { %1755 = vrsqrt.f32 %v2399_v58  ;;  %vm1374_vm6 = vcmp.eq.f32.partialorder %v2399_v58, inf  ;;  %v1377_v40 = vand.u32 2147483648, %v2399_v58  ;;  %vm1376_vm8 = vcmp.eq.f32.partialorder %v2399_v58, 0.0 }
 0x35a   : > { %v1422_v11 = vsel %vm319_vm0, %v1415_v31, 0.0  ;;  %v823_v0 = vmul.f32 %v822_v57, %v2354_v21  ;;  %1757 = vrsqrt.f32 %v2401_v61  ;;  %vm836_vm7 = vcmp.eq.f32.partialorder %v2401_v61, inf }
 0x35b   : > { %v1423_v1 = vadd.f32 %v1422_v11, %v1421_v52  ;;  %v839_v41 = vand.u32 2147483648, %v2401_v61  ;;  %vm838_vm9 = vcmp.eq.f32.partialorder %v2401_v61, 0.0  ;;  %v1258_v11 = vmul.f32 %v1218_v37, %v1218_v37 }
 0x35c   : > { %v825_v10 = vsel %vm824_vm3, %v2354_v21, %v823_v0  ;;  %v752_v21 = vpop.permute.xlu2 %751  ;;  %vm1457_vm3 = vcmask 0  }
 0x35d   : > { %v828_v18 = vsel %vm826_vm5, %v827_v7, %v825_v10  ;;  %v2429_v3 = vadd.f32 %v752_v21, %v720_v24 }
 0x35e   : > { %v1407_v26 = vsub.f32 %v828_v18, %v1366_v13 }
 0x35f   : > { %v1756_v46 = vpop.eup %1755  ;;  %1759 = vrsqrt.f32 %v2429_v3  ;;  %vm860_vm14 = vcmp.eq.f32.partialorder %v2429_v3, inf  ;;  %vm862_vm1 = vcmp.eq.f32.partialorder %v2429_v3, 0.0 }
 0x360   : > { %v1758_v22 = vpop.eup %1757  ;;  %v1417_v23 = vmul.f32 %v1407_v26, %v1407_v26  ;;  %v1368_v14 = vmul.f32 %v1756_v46, %v2399_v58 }
 0x361   : > { %v830_v53 = vmul.f32 %v1758_v22, %v2401_v61 }
 0x362   : > { %v1424_v59 = vsel %vm319_vm0, %v1417_v23, 0.0  ;;  %v1369_v25 = vmul.f32 %v1756_v46, %v1368_v14 }
 0x363   : > { %v2427_v28 = vadd.f32 %v1424_v59, %v1423_v1  ;;  %v831_v6 = vmul.f32 %v1758_v22, %v830_v53 }
 0x364   : > { %v1370_v33 = vmul.f32 0.5, %v1369_v25 }
 0x365   : > { %v832_v34 = vmul.f32 0.5, %v831_v6  ;;  %v1760_v48 = vpop.eup %1759 }
 0x366   : > { %v1371_v30 = vsub.f32 1.5, %v1370_v33  ;;  %v1288_v62 = vpop.permute.xlu1 %1287  ;;  %v854_v38 = vmul.f32 %v1760_v48, %v2429_v3 }
 0x367   : > { %v833_v19 = vsub.f32 1.5, %v832_v34  ;;  %v750_v39 = vpop.permute.xlu0 %749  ;;  %v1305_v20 = vadd.f32 %v1288_v62, %v1257_v36 }
 0x368   : > { %v1372_v27 = vmul.f32 %v1756_v46, %v1371_v30  ;;  %v767_v49 = vadd.f32 %v750_v39, %v719_v17  ;;  %v855_v0 = vmul.f32 %v1760_v48, %v854_v38  ;;  %v863_v39 = vand.u32 2147483648, %v2429_v3 }
 0x369   : > { %v834_v4 = vmul.f32 %v1758_v22, %v833_v19  ;;  %1761 = vrsqrt.f32 %v1305_v20  ;;  %vm1386_vm10 = vcmp.eq.f32.partialorder %v1305_v20, inf  ;;  %v1389_v8 = vand.u32 2147483648, %v1305_v20 }
 0x36a   : > { %v1373_v42 = vmul.f32 %v1372_v27, %v2399_v58  ;;  %1763 = vrsqrt.f32 %v767_v49  ;;  %v856_v32 = vmul.f32 0.5, %v855_v0  ;;  %vm848_vm11 = vcmp.eq.f32.partialorder %v767_v49, inf }
 0x36b   : > { %v835_v16 = vmul.f32 %v834_v4, %v2401_v61  ;;  %v851_v26 = vand.u32 2147483648, %v767_v49  ;;  %vm1388_vm12 = vcmp.eq.f32.partialorder %v1305_v20, 0.0  ;;  %vm850_vm13 = vcmp.eq.f32.partialorder %v767_v49, 0.0 }
 0x36c   : > { %v1375_v43 = vsel %vm1374_vm6, %v2399_v58, %v1373_v42  ;;  %v857_v23 = vsub.f32 1.5, %v856_v32 }
 0x36d   : > { %v837_v44 = vsel %vm836_vm7, %v2401_v61, %v835_v16  ;;  %v1378_v45 = vsel %vm1376_vm8, %v1377_v40, %v1375_v43  ;;  %v1412_v16 = vld [vmem:[#allocation2 + $0x8] sm:$0xff] }
 0x36e   : > { %v840_v9 = vsel %vm838_vm9, %v839_v41, %v837_v44  ;;  %v858_v24 = vmul.f32 %v1760_v48, %v857_v23 }
 0x36f   : > { %v1762_v50 = vpop.eup %1761  ;;  %v1408_v51 = vsub.f32 %v840_v9, %v1378_v45 }
 0x370   : > { %v1764_v35 = vpop.eup %1763  ;;  %v1380_v55 = vmul.f32 %v1762_v50, %v1305_v20  ;;  %v859_v34 = vmul.f32 %v858_v24, %v2429_v3 }
 0x371   : > { %v1418_v47 = vmul.f32 %v1408_v51, %v1408_v51  ;;  %v842_v56 = vmul.f32 %v1764_v35, %v767_v49 }
 0x372   : > { %v1381_v15 = vmul.f32 %v1762_v50, %v1380_v55  ;;  %v861_v62 = vsel %vm860_vm14, %v2429_v3, %v859_v34 }
 0x373   : > { %v1431_v58 = vsel %vm319_vm0, %v1418_v47, 0.0  ;;  %v843_v31 = vmul.f32 %v1764_v35, %v842_v56  ;;  %v864_v27 = vsel %vm862_vm1, %v863_v39, %v861_v62 }
 0x374   : > { %v1432_v57 = vadd.f32 %v1431_v58, %v2394_v54  ;;  %v1382_v61 = vmul.f32 0.5, %v1381_v15 }
 0x375   : > { %v844_v52 = vmul.f32 0.5, %v843_v31 }
 0x376   : > { %v1383_v63 = vsub.f32 1.5, %v1382_v61 }
 0x377   : > { %v845_v1 = vsub.f32 1.5, %v844_v52  ;;  %v1290_v2 = vpop.permute.xlu0 %1289 }
 0x378   : > { %v1384_v7 = vmul.f32 %v1762_v50, %v1383_v63  ;;  %v1306_v10 = vadd.f32 %v1290_v2, %v1258_v11 }
 0x379   : > { %v846_v13 = vmul.f32 %v1764_v35, %v845_v1 }
 0x37a   : > { %v1385_v18 = vmul.f32 %v1384_v7, %v1305_v20  ;;  %1765 = vrsqrt.f32 %v1306_v10  ;;  %vm1398_vm15 = vcmp.eq.f32.partialorder %v1306_v10, inf  ;;  %vm1400_vm2 = vcmp.eq.f32.partialorder %v1306_v10, 0.0 }
 0x37b   : > { %v847_v12 = vmul.f32 %v846_v13, %v767_v49 }
 0x37c   : > { %v1387_v46 = vsel %vm1386_vm10, %v1305_v20, %v1385_v18  ;;  %v1401_v20 = vand.u32 2147483648, %v1306_v10 }
 0x37d   : > { %v849_v54 = vsel %vm848_vm11, %v767_v49, %v847_v12  ;;  %v1390_v60 = vsel %vm1388_vm12, %v1389_v8, %v1387_v46 }
 0x37e   : > { %v852_v22 = vsel %vm850_vm13, %v851_v26, %v849_v54 }
 0x37f   : > { %v1409_v14 = vsub.f32 %v852_v22, %v1390_v60 }
 0x380   : > { %v1766_v5 = vpop.eup %1765 }
 0x381   : > { %v1419_v21 = vmul.f32 %v1409_v14, %v1409_v14  ;;  %v1392_v53 = vmul.f32 %v1766_v5, %v1306_v10 }
 0x383   : > { %v1426_v59 = vsel %vm319_vm0, %v1419_v21, 0.0  ;;  %v1393_v25 = vmul.f32 %v1766_v5, %v1392_v53 }
 0x384   : > { %v1427_v6 = vadd.f32 %v1426_v59, %v2427_v28 }
 0x385   : > { %v1394_v33 = vmul.f32 0.5, %v1393_v25 }
 0x386   : > { %v1435_v36 = vadd.f32 %v1427_v6, %v1411_v29 }
 0x387   : > { %v1395_v17 = vsub.f32 1.5, %v1394_v33 }
 0x388   : > { %1437 = vst.msk [vmem:[#allocation2] sm:$0xff] %vm319_vm0, %v1435_v36 }
 0x389   : > { %v1396_v30 = vmul.f32 %v1766_v5, %v1395_v17 }
 0x38b   : > { %v1397_v19 = vmul.f32 %v1396_v30, %v1306_v10 }
 0x38d   : > { %v1399_v28 = vsel %vm1398_vm15, %v1306_v10, %v1397_v19 }
 0x38e   : > { %v1402_v49 = vsel %vm1400_vm2, %v1401_v20, %v1399_v28 }
 0x38f   : > { %v1410_v4 = vsub.f32 %v864_v27, %v1402_v49  ;;  %v1442_v44 = vld [vmem:[#allocation2] sm:$0xff] }
 0x390   : > { %v1444_v48 = vsel %vm319_vm0, %v1442_v44, 0.0 }
 0x391   : > { %v1420_v42 = vmul.f32 %v1410_v4, %v1410_v4 }
 0x393   : > { %v1433_v40 = vsel %vm319_vm0, %v1420_v42, 0.0 }
 0x394   : > { %v1434_v41 = vadd.f32 %v1433_v40, %v1432_v57 }
 0x396   : > { %v1436_v43 = vadd.f32 %v1434_v41, %v1412_v16 }
 0x398   : > { %1438 = vst.msk [vmem:[#allocation2 + $0x8] sm:$0xff] %vm319_vm0, %v1436_v43 }
 0x39f   : > { %v1443_v45 = vld [vmem:[#allocation2 + $0x8] sm:$0xff] }
 0x3a0   : > { %v1445_v3 = vsel %vm319_vm0, %v1443_v45, 0.0 }
 0x3a1   : > { %v1446_v9 = vadd.f32 %v1445_v3, %v1444_v48 }
 0x3a3   : > { %1447 = vadd.xlane.f32.xlu2 %v1446_v9 }
 0x416   : > { %v1448_v50 = vpop.xlane.xlu2 %1447 }
 0x417   : > { %v1449_v51 = vrot.slane %v1448_v50, 4 }
 0x419   : > { %v1450_v35 = vadd.f32 %v1449_v51, %v1448_v50 }
 0x41b   : > { %v1451_v55 = vrot.slane %v1450_v35, 2 }
 0x41d   : > { %v1452_v47 = vadd.f32 %v1451_v55, %v1450_v35 }
 0x41f   : > { %v1453_v56 = vrot.slane %v1452_v47, 1 }
 0x421   : > { %v1454_v37 = vadd.f32 %v1453_v56, %v1452_v47 }
 0x423   : > { %1647 = vpush %v1454_v37 }
 0x454   : > { %s1648_s10 = spop %1647 }
 0x455   : > { %v1456_v15 = vstv %s1648_s10 }
 0x456   : > { %1458 = vst.msk [vmem:[%s314_s9] sm:$0x1] %vm1457_vm3, %v1456_v15 }
 0x457 PF: > { %s21_s20 = sadd.s32 1, %s1949_s20   ;;  %s2498_s15 = smov %s1933_s16 }
 0x458   : > { %p18_p2 = scmp.ge.s32.totalorder %s21_s20, 4   ;;  %s2499_s16 = smov %s1937_s17 }
 0x459   : > { %s2500_s17 = smov %s2064_s26  ;;  %s2501_s18 = smov %s1945_s19 }
 0x45a   : > { %s2502_s19 = smov %s2504_s11  ;;  %20 = sbr.rel (!%p18_p2) target bundleno = 9 (0x9), region = 105 }
 0x45f   :  { %1476 = vsyncpa [#allocation4], 1 }
 0x460   :  { %1478 = vsyncpa [#allocation4 + $0x1], 1 }
 0x461   :  { %1479 = vsyncpa [#allocation6], 1 }
 0x462   :  { %1481 = vsyncpa [#allocation6 + $0x1], 1 }
 0x463   :  { %1482 = vsyncpa [#allocation9], 1 }

</bundles_post_ra>
